<compile_context>
chip_gen: v7x
topology: tpu7x:2x2x1
jax: 0.10.0
libtpu: 0.0.40
codegen_flags: <defaults>
</compile_context>

<pallas_src>
import math

import jax
import jax.numpy as jnp
from jax import lax
from jax.experimental import pallas as pl
from jax.experimental.pallas import tpu as pltpu

_VMEM_LIMIT = 48 * 1024 * 1024  # leave headroom on v7x (64 MiB physical VMEM)


def _pick_tile(n, target, align):
    """Largest tile <= target that divides n and is a multiple of `align`.
    Falls back to the full dimension (always a legal Pallas block)."""
    if n <= target:
        return n
    for d in range(target, 0, -1):
        if n % d == 0 and d % align == 0:
            return d
    return n


# ----------------------------- Tiled linear kernel ---------------------------
def _linear_kernel(x_ref, w_ref, b_ref, o_ref, acc_ref):
    @pl.when(pl.program_id(2) == 0)
    def _init():
        acc_ref[...] = jnp.zeros(acc_ref.shape, acc_ref.dtype)

    # Cast activations to the weight dtype (bf16 fast path) so the MXU runs at
    # bf16 peak; accumulate in f32.
    acc_ref[...] += jnp.dot(x_ref[...].astype(w_ref.dtype), w_ref[...],
                            preferred_element_type=jnp.float32)

    @pl.when(pl.program_id(2) == pl.num_programs(2) - 1)
    def _store():
        o_ref[...] = (acc_ref[...] + b_ref[...].astype(jnp.float32)
                      ).astype(o_ref.dtype)


def linear(x2d, w, b, *, out_dtype=None, block_rows=512, block_cols=512,
           block_k=1024):
    """x2d: (N, Din), w: (Din, Dout), b: (1, Dout) -> (N, Dout).

    Grid = (row blocks, col blocks, K blocks); rows/cols are 'parallel', the
    K axis is 'arbitrary' with an f32 VMEM accumulator so the weight matrix is
    streamed once per (row, col) tile instead of once per row block at full Din.
    """
    N, Din = x2d.shape
    Dout = w.shape[1]
    out_dtype = out_dtype or x2d.dtype
    bn = _pick_tile(N, block_rows, 8)
    bd = _pick_tile(Dout, block_cols, 128)   # lane-dense output blocks
    bk = _pick_tile(Din, block_k, 128)
    grid = (N // bn, Dout // bd, Din // bk)
    return pl.pallas_call(
        _linear_kernel,
        out_shape=jax.ShapeDtypeStruct((N, Dout), out_dtype),
        grid=grid,
        in_specs=[
            pl.BlockSpec((bn, bk), lambda i, j, k: (i, k)),
            pl.BlockSpec((bk, bd), lambda i, j, k: (k, j)),
            pl.BlockSpec((1, bd), lambda i, j, k: (0, j)),
        ],
        out_specs=pl.BlockSpec((bn, bd), lambda i, j, k: (i, j)),
        scratch_shapes=[pltpu.VMEM((bn, bd), jnp.float32)],
        compiler_params=pltpu.CompilerParams(
            dimension_semantics=("parallel", "parallel", "arbitrary"),
            vmem_limit_bytes=_VMEM_LIMIT),
    )(x2d, w, b)


# --------------------- Flash-style fused attention kernel --------------------
def _make_attention_kernel(with_bias, with_probs, approx_recip):
    def kernel(*refs):
        i = 0
        q_ref, k_ref, v_ref = refs[0], refs[1], refs[2]
        i = 3
        bias_ref = None
        if with_bias:
            bias_ref = refs[i]; i += 1
        wo_ref, bo_ref = refs[i], refs[i + 1]; i += 2
        o_ref = refs[i]; i += 1
        p_ref = None
        if with_probs:
            p_ref = refs[i]; i += 1
        m_sc, l_sc, acc_sc = refs[i], refs[i + 1], refs[i + 2]

        kj = pl.program_id(2)

        @pl.when(kj == 0)
        def _init():
            m_sc[...] = jnp.full(m_sc.shape, -jnp.inf, m_sc.dtype)
            l_sc[...] = jnp.zeros(l_sc.shape, l_sc.dtype)
            acc_sc[...] = jnp.zeros(acc_sc.shape, acc_sc.dtype)

        q = q_ref[0]                       # (H, tq, dk)  compute dtype (bf16 fast path)
        k = k_ref[0]                       # (H, tkv, dk)
        v = v_ref[0]                       # (H, tkv, dk)

        # Scores: 1/sqrt(dk) already folded into the Q projection weights.
        s = lax.dot_general(q, k, (((2,), (2,)), ((0,), (0,))),
                            preferred_element_type=jnp.float32)   # (H, tq, tkv)
        if with_bias:
            s = s + bias_ref[0]            # (1, tkv) additive mask bias (0 / -1e30)

        # Online softmax update (f32 math; keeps v5e happy, no NaNs on masked rows).
        m_prev = m_sc[...]
        m_new = jnp.maximum(m_prev, jnp.max(s, axis=-1, keepdims=True))
        e = jnp.exp(s - m_new)                                     # (H, tq, tkv)
        alpha = jnp.exp(m_prev - m_new)                            # (H, tq, 1)
        l_sc[...] = alpha * l_sc[...] + jnp.sum(e, axis=-1, keepdims=True)
        acc_sc[...] = alpha * acc_sc[...] + lax.dot_general(
            e.astype(v.dtype), v, (((2,), (1,)), ((0,), (0,))),
            preferred_element_type=jnp.float32)                    # (H, tq, dk)
        m_sc[...] = m_new

        @pl.when(kj == pl.num_programs(2) - 1)
        def _finalize():
            inv_l = pl.reciprocal(l_sc[...], approx=approx_recip)  # (H, tq, 1)
            if with_probs:
                # Only valid because the wrapper forces a single kv block here.
                p_ref[0] = (e * inv_l).astype(p_ref.dtype)
            ctx = (acc_sc[...] * inv_l).astype(wo_ref.dtype)       # (H, tq, dk)
            # Fused output projection: one batched dot_general over heads + head-sum.
            # TODO(synk): single dot_general contracting over (H, dk) (K = D) once
            # Mosaic supports multi-dim contraction dimension numbers.
            part = lax.dot_general(ctx, wo_ref[...],
                                   (((2,), (1,)), ((0,), (0,))),
                                   preferred_element_type=jnp.float32)  # (H, tq, D)
            out = jnp.sum(part, axis=0) + bo_ref[...]
            o_ref[0] = out.astype(o_ref.dtype)

    return kernel


# --------------------------------- Weight prep --------------------------------
def init_params(key, d_model):
    """Deterministic init matching nn.Linear's default U(-1/sqrt(in), 1/sqrt(in))."""
    bound = 1.0 / math.sqrt(d_model)
    params = []
    for _ in range(4):  # q, k, v, out projections
        key, kw, kb = jax.random.split(key, 3)
        w = jax.random.uniform(kw, (d_model, d_model), jnp.float32, -bound, bound)
        b = jax.random.uniform(kb, (1, d_model), jnp.float32, -bound, bound)
        params.extend([w, b])
    return tuple(params)


def prepare_params(params, heads_n, compute_dtype=jnp.bfloat16):
    """One-time prep: fuse Wq|Wk|Wv, fold 1/sqrt(dk) into the Q slice, reshape
    Wo per head, cast matmul weights to the MXU compute dtype."""
    wq, bq, wk, bk, wv, bv, wo, bo = params
    d_model = wq.shape[0]
    assert d_model % heads_n == 0
    dk = d_model // heads_n
    scale = 1.0 / math.sqrt(dk)
    wqkv = jnp.concatenate([wq * scale, wk, wv], axis=1).astype(compute_dtype)
    bqkv = jnp.concatenate([bq * scale, bk, bv], axis=1).astype(jnp.float32)
    return dict(
        heads_n=heads_n, dk=dk, d_model=d_model, compute_dtype=compute_dtype,
        wqkv=wqkv, bqkv=bqkv,
        wo=wo.reshape(heads_n, dk, d_model).astype(compute_dtype),
        bo=bo.astype(jnp.float32))


# ------------------------------ Forward wrapper -------------------------------
def multi_head_attention(query, key, value, prep, mask=None, return_probs=False,
                         probs_dtype=jnp.float32, q_block=256, kv_block=512):
    """Eval-mode forward pass of the PyTorch MultiHeadAttention module.

    query/key/value: (B, S, D).  mask: optional (B, S_kv) of {0,1} over key tokens.
    Returns (output (B, Sq, D), attention_probs (B, H, Sq, Skv) or None).
    """
    B, Sq, D = query.shape
    Skv = key.shape[1]
    H, dk = prep["heads_n"], prep["dk"]
    cd = prep["compute_dtype"]
    wqkv, bqkv = prep["wqkv"], prep["bqkv"]

    # ---- projections (fused QKV matmul when q/k/v share the same input) ------
    if (query is key) and (key is value):
        qkv2d = linear(query.reshape(B * Sq, D), wqkv, bqkv, out_dtype=cd)
        qkv = qkv2d.reshape(B, Sq, 3, H, dk).transpose(2, 0, 3, 1, 4)
        q5, k5, v5 = qkv[0], qkv[1], qkv[2]
    elif key is value:  # cross-attention with a shared K/V source: fuse K|V
        q2d = linear(query.reshape(B * Sq, D), wqkv[:, :D], bqkv[:, :D], out_dtype=cd)
        kv2d = linear(key.reshape(B * Skv, D), wqkv[:, D:], bqkv[:, D:], out_dtype=cd)
        q5 = q2d.reshape(B, Sq, H, dk).transpose(0, 2, 1, 3)
        kv = kv2d.reshape(B, Skv, 2, H, dk).transpose(2, 0, 3, 1, 4)
        k5, v5 = kv[0], kv[1]
    else:
        q2d = linear(query.reshape(B * Sq, D), wqkv[:, :D], bqkv[:, :D], out_dtype=cd)
        k2d = linear(key.reshape(B * Skv, D), wqkv[:, D:2 * D], bqkv[:, D:2 * D],
                     out_dtype=cd)
        v2d = linear(value.reshape(B * Skv, D), wqkv[:, 2 * D:], bqkv[:, 2 * D:],
                     out_dtype=cd)
        q5 = q2d.reshape(B, Sq, H, dk).transpose(0, 2, 1, 3)
        k5 = k2d.reshape(B, Skv, H, dk).transpose(0, 2, 1, 3)
        v5 = v2d.reshape(B, Skv, H, dk).transpose(0, 2, 1, 3)

    with_bias = mask is not None
    tq = _pick_tile(Sq, q_block, 8)
    # Exact probs need the full key axis per step; otherwise tile kv (flash).
    tkv = Skv if return_probs else _pick_tile(Skv, kv_block, 128)
    grid = (B, Sq // tq, Skv // tkv)

    in_specs = [
        pl.BlockSpec((1, H, tq, dk), lambda b, qi, kj: (b, 0, qi, 0)),
        pl.BlockSpec((1, H, tkv, dk), lambda b, qi, kj: (b, 0, kj, 0)),
        pl.BlockSpec((1, H, tkv, dk), lambda b, qi, kj: (b, 0, kj, 0)),
    ]
    inputs = [q5, k5, v5]
    if with_bias:
        bias = jnp.where(mask.reshape(B, 1, Skv) == 0,
                         jnp.float32(-1e30), jnp.float32(0.0))
        in_specs.append(pl.BlockSpec((1, 1, tkv), lambda b, qi, kj: (b, 0, kj)))
        inputs.append(bias)
    in_specs += [
        pl.BlockSpec((H, dk, D), lambda b, qi, kj: (0, 0, 0)),
        pl.BlockSpec((1, D), lambda b, qi, kj: (0, 0)),
    ]
    inputs += [prep["wo"], prep["bo"]]

    o_sds = jax.ShapeDtypeStruct((B, Sq, D), query.dtype)
    o_spec = pl.BlockSpec((1, tq, D), lambda b, qi, kj: (b, qi, 0))
    if return_probs:
        p_sds = jax.ShapeDtypeStruct((B, H, Sq, Skv), probs_dtype)
        p_spec = pl.BlockSpec((1, H, tq, Skv), lambda b, qi, kj: (b, 0, qi, 0))
        out_shape, out_specs = (o_sds, p_sds), (o_spec, p_spec)
    else:
        out_shape, out_specs = o_sds, o_spec

    approx_recip = prep["compute_dtype"] != jnp.float32
    kernel = _make_attention_kernel(with_bias, return_probs, approx_recip)

    results = pl.pallas_call(
        kernel,
        out_shape=out_shape,
        grid=grid,
        in_specs=in_specs,
        out_specs=out_specs,
        scratch_shapes=[pltpu.VMEM((H, tq, 1), jnp.float32),   # running max
                        pltpu.VMEM((H, tq, 1), jnp.float32),   # running denom
                        pltpu.VMEM((H, tq, dk), jnp.float32)], # running context
        compiler_params=pltpu.CompilerParams(
            dimension_semantics=("parallel", "parallel", "arbitrary"),
            vmem_limit_bytes=_VMEM_LIMIT),
    )(*inputs)

    if return_probs:
        return results[0], results[1]
    return results, None


# ---------------------------- Pure-JAX reference ------------------------------
def reference(query, key, value, params, heads_n, mask=None):
    B, S, D = query.shape
    dk = D // heads_n
    wq, bq, wk, bk, wv, bv, wo, bo = params

    def proj(x, w, b):
        b_, s_, _ = x.shape
        return (x @ w + b).reshape(b_, s_, heads_n, dk).transpose(0, 2, 1, 3)

    q, k, v = proj(query, wq, bq), proj(key, wk, bk), proj(value, wv, bv)
    scores = jnp.einsum("bhqd,bhkd->bhqk", q, k) / math.sqrt(dk)
    if mask is not None:
        scores = jnp.where(mask[:, None, None, :] == 0, -jnp.inf, scores)
    p = jax.nn.softmax(scores, axis=-1)
    ctx = jnp.einsum("bhqk,bhkd->bhqd", p, v)
    ctx = ctx.transpose(0, 2, 1, 3).reshape(B, S, D)
    return ctx @ wo + bo, p


# --------------------------------- Main --------------------------------------
if __name__ == "__main__":
    B, S, D, H = 2, 8, 32, 4

    root = jax.random.PRNGKey(0)
    kx, kkv, kp = jax.random.split(root, 3)
    x = jax.random.normal(kx, (B, S, D), jnp.float32)
    params = init_params(kp, D)

    # Key-token mask (1 = keep, 0 = mask); no fully-masked rows.
    mask = jnp.ones((B, S), jnp.float32).at[1, -2:].set(0.0)
    ref_out, ref_p = reference(x, x, x, params, H, mask=mask)

    # 1) Exact path (f32 MXU operands, exact reciprocal): tight correctness check.
    prep_f32 = prepare_params(params, H, compute_dtype=jnp.float32)
    out32, p32 = multi_head_attention(x, x, x, prep_f32, mask=mask,
                                      return_probs=True)
    jax.block_until_ready(out32)
    assert jnp.allclose(out32, ref_out, atol=2e-4, rtol=1e-3)
    assert jnp.allclose(p32, ref_p, atol=2e-5, rtol=1e-4)

    # 2) Fast path (bf16 MXU operands, approx reciprocal): loose tolerance.
    prep_bf16 = prepare_params(params, H, compute_dtype=jnp.bfloat16)
    out16, p16 = multi_head_attention(x, x, x, prep_bf16, mask=mask,
                                      return_probs=True)
    jax.block_until_ready(out16)
    assert jnp.allclose(out16, ref_out, atol=7.5e-2, rtol=5e-2)
    assert jnp.allclose(p16, ref_p, atol=3e-2, rtol=5e-2)

    # 3) Cross-attention (shared K/V source), no mask, probs not materialized.
    kv_in = jax.random.normal(kkv, (B, S, D), jnp.float32)
    ref_out2, _ = reference(x, kv_in, kv_in, params, H, mask=None)
    out2, none_p = multi_head_attention(x, kv_in, kv_in, prep_bf16, mask=None,
                                        return_probs=False)
    jax.block_until_ready(out2)
    assert none_p is None
    assert jnp.allclose(out2, ref_out2, atol=7.5e-2, rtol=5e-2)

    print("KERNEL_OK")
</pallas_src>

<mosaic_0001>
module attributes {stable_mosaic.version = 11 : i64} {
  func.func @_linear_kernel(%arg0: i32, %arg1: i32, %arg2: i32, %arg3: memref<16x32xf32, #tpu.memory_space<vmem>>, %arg4: memref<32x96xf32, #tpu.memory_space<vmem>>, %arg5: memref<1x96xf32, #tpu.memory_space<vmem>>, %arg6: memref<16x96xf32, #tpu.memory_space<vmem>>, %arg7: memref<16x96xf32, #tpu.memory_space<vmem>>) attributes {dimension_semantics = [#tpu.dimension_semantics<parallel>, #tpu.dimension_semantics<parallel>, #tpu.dimension_semantics<arbitrary>], iteration_bounds = array<i64: 1, 1, 1>, scalar_prefetch = 0 : i64, scratch_operands = 1 : i64, tpu.core_type = #tpu.core_type<tc>, window_params = [{transform_indices = @transform_0, window_bounds = array<i64: 16, 32>}, {transform_indices = @transform_1, window_bounds = array<i64: 32, 96>}, {transform_indices = @transform_2, window_bounds = array<i64: 1, 96>}, {transform_indices = @transform_3, window_bounds = array<i64: 16, 96>}]} {
    %c0_i32 = arith.constant 0 : i32
    %0 = arith.cmpi eq, %arg2, %c0_i32 : i32
    %1 = arith.extui %0 : i1 to i32
    %c0_i32_0 = arith.constant 0 : i32
    %2 = arith.cmpi ne, %1, %c0_i32_0 : i32
    scf.if %2 {
      %cst_10 = arith.constant 0.000000e+00 : f32
      %12 = vector.broadcast %cst_10 : f32 to vector<16x96xf32>
      %c0_11 = arith.constant 0 : index
      %c0_12 = arith.constant 0 : index
      %13 = vector.load %arg7[%c0_11, %c0_12] : memref<16x96xf32, #tpu.memory_space<vmem>>, vector<16x96xf32>
      tpu.vector_store %arg7[%c0_11, %c0_12], %12 {strides = array<i32>} : memref<16x96xf32, #tpu.memory_space<vmem>>, vector<16x96xf32>,
    } else {
    }
    %c0 = arith.constant 0 : index
    %c0_1 = arith.constant 0 : index
    %3 = vector.load %arg7[%c0, %c0_1] : memref<16x96xf32, #tpu.memory_space<vmem>>, vector<16x96xf32>
    %c0_2 = arith.constant 0 : index
    %c0_3 = arith.constant 0 : index
    %4 = vector.load %arg3[%c0_2, %c0_3] : memref<16x32xf32, #tpu.memory_space<vmem>>, vector<16x32xf32>
    %c0_4 = arith.constant 0 : index
    %c0_5 = arith.constant 0 : index
    %5 = vector.load %arg4[%c0_4, %c0_5] : memref<32x96xf32, #tpu.memory_space<vmem>>, vector<32x96xf32>
    %cst = arith.constant dense<0.000000e+00> : vector<16x96xf32>
    %6 = tpu.matmul %4, %5, %cst {dimension_numbers = #tpu.dot_dimension_numbers<[1], [0], [0], [1], [0, 0, 1, 1], [], []>} : vector<16x32xf32>, vector<32x96xf32>, vector<16x96xf32> -> vector<16x96xf32>
    %7 = arith.addf %3, %6 : vector<16x96xf32>
    %c0_6 = arith.constant 0 : index
    %c0_7 = arith.constant 0 : index
    %8 = vector.load %arg7[%c0_6, %c0_7] : memref<16x96xf32, #tpu.memory_space<vmem>>, vector<16x96xf32>
    tpu.vector_store %arg7[%c0_6, %c0_7], %7 {strides = array<i32>} : memref<16x96xf32, #tpu.memory_space<vmem>>, vector<16x96xf32>,
    %c0_i32_8 = arith.constant 0 : i32
    %9 = arith.cmpi eq, %arg2, %c0_i32_8 : i32
    %10 = arith.extui %9 : i1 to i32
    %c0_i32_9 = arith.constant 0 : i32
    %11 = arith.cmpi ne, %10, %c0_i32_9 : i32
    scf.if %11 {
      %c0_10 = arith.constant 0 : index
      %c0_11 = arith.constant 0 : index
      %12 = vector.load %arg7[%c0_10, %c0_11] : memref<16x96xf32, #tpu.memory_space<vmem>>, vector<16x96xf32>
      %c0_12 = arith.constant 0 : index
      %c0_13 = arith.constant 0 : index
      %13 = vector.load %arg5[%c0_12, %c0_13] : memref<1x96xf32, #tpu.memory_space<vmem>>, vector<1x96xf32>
      %14 = vector.broadcast %13 : vector<1x96xf32> to vector<16x96xf32>
      %15 = arith.addf %12, %14 : vector<16x96xf32>
      %c0_14 = arith.constant 0 : index
      %c0_15 = arith.constant 0 : index
      %16 = vector.load %arg6[%c0_14, %c0_15] : memref<16x96xf32, #tpu.memory_space<vmem>>, vector<16x96xf32>
      tpu.vector_store %arg6[%c0_14, %c0_15], %15 {strides = array<i32>} : memref<16x96xf32, #tpu.memory_space<vmem>>, vector<16x96xf32>,
    } else {
    }
    return
  }
  func.func @transform_0(%arg0: i32, %arg1: i32, %arg2: i32) -> (i32, i32) {
    %c0_i32 = arith.constant 0 : i32
    return %arg0, %arg2 : i32, i32
  }
  func.func @transform_1(%arg0: i32, %arg1: i32, %arg2: i32) -> (i32, i32) {
    %c0_i32 = arith.constant 0 : i32
    return %arg2, %arg1 : i32, i32
  }
  func.func @transform_2(%arg0: i32, %arg1: i32, %arg2: i32) -> (i32, i32) {
    %c0_i32 = arith.constant 0 : i32
    %c0_i32_0 = arith.constant 0 : i32
    return %c0_i32, %arg1 : i32, i32
  }
  func.func @transform_3(%arg0: i32, %arg1: i32, %arg2: i32) -> (i32, i32) {
    %c0_i32 = arith.constant 0 : i32
    return %arg0, %arg1 : i32, i32
  }
}

</mosaic_0001>

<bundles_post_ra>
// kernel: tpu_custom_call.1
= control target key start
LH: loop header
LB: loop body
LE: loop exit
PB: predicated region body
PF: predicated region fallthrough
CT: control target
= control target key end

     0   :  { %8 = vsyncpa [#allocation4], 0  ;;  %s365_s0 = inlined_call_operand.hbm [shape: f32[16,32], index: 0, kind: input, shape index: {}]   ;;  %s366_s1 = inlined_call_operand.hbm [shape: f32[32,96], index: 1, kind: input, shape index: {}]   ;;  %s367_s2 = inlined_call_operand.vmem [shape: f32[1,96], index: 2, kind: input, shape index: {}]   ;;  %s368_s3 = inlined_call_operand.hbm [shape: f32[16,96], index: 3, kind: output, shape index: {}]  }
   0x1   :  { %9 = vsyncpa [#allocation7], 0 }
   0x2   :  { %10 = vsyncpa [#allocation5], 0  ;;  %s285_s12 = smov [#allocation3]   ;;  %s213_s16 = scalar_lea.hbm %s365_s0, 256 }
   0x3   :  { %s16_s13 = sshll.u32 %s285_s12, 4  ;;  %p214_p0 = scmp.ne.s32.totalorder %s365_s0, %s213_s16  ;;  %s17_s13 = int_to_ptr.vmem [resolvable:$true] %s16_s13 }
   0x4   :  { %p217_p1 = scmp.lt.u32.totalorder %s213_s16, %s365_s0 }
   0x6   :  { %p219_p2 = pnand %p217_p1, %p214_p0 }
   0x8   :  { %222 = shalt.err (!%p219_p2)
}
   0x9   :  { %s223_s21 = scalar_lea.vmem %s17_s13, 256  ;;  %p228_p4 = scmp.lt.s32.totalorder %s17_s13, %s17_s13 }
   0xa   :  { %p224_p3 = scmp.ne.s32.totalorder %s17_s13, %s223_s21  ;;  %p229_p5 = scmp.lt.s32.totalorder %s223_s21, %s223_s21 }
   0xc   :  { %p230_p6 = por %p229_p5, %p228_p4 }
   0xe   :  { %p231_p7 = pnand %p230_p6, %p224_p3 }
  0x10   :  { %234 = shalt.err (!%p231_p7)
}
  0x11   :  { %s286_s22 = smov 128   ;;  %s287_s23 = smov 8  }
  0x12   :  { %22 = dma.hbm_to_vmem [thread:$0]  %s365_s0, 256, %s17_s13, [#allocation4], %s286_s22, %s286_s22, %s287_s23  }
  0x13   :  { %s288_s26 = smov [#allocation6]   ;;  %s235_s30 = scalar_lea.hbm %s366_s1, 512 }
  0x14   :  { %s28_s27 = sshll.u32 %s288_s26, 4  ;;  %p236_p8 = scmp.ne.s32.totalorder %s366_s1, %s235_s30  ;;  %s29_s27 = int_to_ptr.vmem [resolvable:$true] %s28_s27 }
  0x15   :  { %p239_p9 = scmp.lt.u32.totalorder %s235_s30, %s366_s1 }
  0x17   :  { %p241_p10 = pnand %p239_p9, %p236_p8 }
  0x19   :  { %244 = shalt.err (!%p241_p10)
}
  0x1a   :  { %s245_s8 = scalar_lea.vmem %s29_s27, 512  ;;  %p250_p12 = scmp.lt.s32.totalorder %s29_s27, %s29_s27 }
  0x1b   :  { %p246_p11 = scmp.ne.s32.totalorder %s29_s27, %s245_s8  ;;  %p251_p13 = scmp.lt.s32.totalorder %s245_s8, %s245_s8 }
  0x1d   :  { %p252_p0 = por %p251_p13, %p250_p12 }
  0x1f   :  { %p253_p1 = pnand %p252_p0, %p246_p11 }
  0x21   :  { %256 = shalt.err (!%p253_p1)
}
  0x22   :  { %34 = dma.hbm_to_vmem [thread:$0]  %s366_s1, 512, %s29_s27, [#allocation7], %s286_s22, %s286_s22, %s287_s23  }
  0x23   :  { %279 = dma.done.wait [#allocation4], 256  }
  0x24   :  { %280 = vsyncadd [#allocation4], 4294967040 }
  0x25   :  { %281 = dma.done.wait [#allocation7], 512  }
  0x26   :  { %282 = vsyncadd [#allocation7], 4294966784  ;;  %vm47_vm0 = vcmask 785408   ;;  %v289_v0 = vmov 0.0   ;;  %vm58_vm1 = vcmask 261120   ;;  %v54_v1 = vld [vmem:[#allocation6] sm:$0xff] }
  0x27   :  { %49 = vst.msk [vmem:[#allocation2 + $0x8] sm:$0xff] %vm47_vm0, %v289_v0  ;;  %48 = vst.msk [vmem:[#allocation2] sm:$0xff] %vm47_vm0, %v289_v0  ;;  %v55_v2 = vld [vmem:[#allocation6 + $0x8] sm:$0xff]  ;;  %v56_v3 = vld [vmem:[#allocation6 + $0x10] sm:$0xff]  ;;  %s290_s11 = smov [#allocation8]  }
  0x28   :  { %v199_v4 = vpack.c.bf16 %v55_v2, %v54_v1  ;;  %v57_v5 = vld [vmem:[#allocation6 + $0x18] sm:$0xff]  ;;  %v52_v6 = vld [vmem:[#allocation3] sm:$0xff]  ;;  %v181_v15 = vld [vmem:[%s367_s2] ss:$0 sm:$0xff]  ;;  %s166_s12 = sshll.u32 %s290_s11, 4  ;;  %s167_s12 = int_to_ptr.vmem [resolvable:$true] %s166_s12 }
  0x29   :  { %v203_v7 = vpack.c.bf16 %v57_v5, %v56_v3  ;;  %196 = vmatprep.mubr.msk.f32.mxu0 %vm58_vm1, %v52_v6  ;;  %v53_v8 = vld [vmem:[#allocation3 + $0x8] sm:$0xff]  ;;  %s257_s13 = scalar_lea.vmem %s167_s12, 256  ;;  %p262_p3 = scmp.lt.s32.totalorder %s167_s12, %s167_s12 }
  0x2a   :  { %200 = vmatprep.subr.bf16.mxu0 %v199_v4  ;;  %p258_p2 = scmp.ne.s32.totalorder %s167_s12, %s257_s13  ;;  %p263_p4 = scmp.lt.s32.totalorder %s257_s13, %s257_s13 }
  0x2b   :  { %202 = vmatpush3.bf16.msra.mxu0 %v199_v4 }
  0x2c   :  { %204 = vmatprep.subr.bf16.mxu0 %v203_v7  ;;  %p264_p5 = por %p263_p4, %p262_p3 }
  0x2e   :  { %v51_v9 = vld [vmem:[#allocation2 + $0x8] sm:$0xff]  ;;  %v50_v10 = vld [vmem:[#allocation2] sm:$0xff]  ;;  %p265_p6 = pnand %p264_p5, %p258_p2 }
  0x2f   :  { %206 = vmatpush3.bf16.msra.mxu0 %v203_v7 }
  0x32   :  { %197 = vmatmul.mubr.msk.f32.vlgmr.msra.gmra.mrb[0].mxu0 %vm58_vm1, %v53_v8 }
 0x105   :  { %v198_v11 = vpop.f32.mrb[0].mxu0 }
 0x106   :  { %v141_v12 = vadd.f32 %v198_v11, %v51_v9  ;;  %v131_v13 = vpop.f32.mrb[1].mxu0 }
 0x107   :  { %v140_v14 = vadd.f32 %v131_v13, %v50_v10 }
 0x108   :  { %144 = vst.msk [vmem:[#allocation2 + $0x8] sm:$0xff] %vm47_vm0, %v141_v12 }
 0x109   :  { %143 = vst.msk [vmem:[#allocation2] sm:$0xff] %vm47_vm0, %v140_v14 }
 0x10f   :  { %v149_v16 = vld [vmem:[#allocation2 + $0x8] sm:$0xff] }
 0x110   :  { %v148_v17 = vld [vmem:[#allocation2] sm:$0xff]  ;;  %v158_v18 = vadd.f32 %v181_v15, %v149_v16 }
 0x111   :  { %v157_v19 = vadd.f32 %v181_v15, %v148_v17 }
 0x112   :  { %160 = vst.msk [vmem:[#allocation8 + $0x8] sm:$0xff] %vm47_vm0, %v158_v18 }
 0x113   :  { %159 = vst.msk [vmem:[#allocation8] sm:$0xff] %vm47_vm0, %v157_v19 }
 0x114   :  { %268 = shalt.err (!%p265_p6)
}
 0x115   :  { %s269_s15 = scalar_lea.hbm %s368_s3, 256 }
 0x116   :  { %p270_p7 = scmp.ne.s32.totalorder %s368_s3, %s269_s15  ;;  %p273_p8 = scmp.lt.u32.totalorder %s269_s15, %s368_s3 }
 0x118   :  { %p275_p9 = pnand %p273_p8, %p270_p7 }
 0x11a   :  { %278 = shalt.err (!%p275_p9)
}
 0x11b   :  { %172 = dma.vmem_to_hbm [thread:$0]  %s167_s12, 256, %s368_s3, [#allocation5], %s286_s22, %s286_s22, %s287_s23  }
 0x11c   :  { %283 = dma.done.wait [#allocation5], 256  }
 0x11d   :  { %284 = vsyncadd [#allocation5], 4294967040 }
 0x11e   :  { %176 = vsyncpa [#allocation4], 1 }
 0x11f   :  { %177 = vsyncpa [#allocation7], 1 }
 0x120   :  { %178 = vsyncpa [#allocation5], 1 }

</bundles_post_ra>
